<compile_context>
chip_gen: v7x
topology: tpu7x:2x2x1
jax: 0.10.0
libtpu: 0.0.40
codegen_flags: <defaults>
</compile_context>

<pallas_src>
import functools

import jax
import jax.numpy as jnp
from jax import lax
from jax.experimental import pallas as pl
from jax.experimental.pallas import tpu as pltpu

ALPHA = 0.25
GAMMA = 2.0
LANES = 128
ROW_ALIGN = 32            # sublane alignment safe for f32 / bf16 / int8 packed tiles
MIN_ROW_TILE = 512        # keep blocks big enough to amortize ~0.35us per grid step
ROW_TILE_MAX = 4096       # 4096x128xf32 = 2 MiB/buffer; 3 streams x 2 bufs = 12 MiB
VMEM_LIMIT_BYTES = 32 * 1024 * 1024


def _focal_loss_math(x, t, alpha, gamma, binary_targets):
    """Elementwise focal-loss math in f32. Works on plain arrays and in-kernel."""
    is_pos = t == 1.0
    if binary_targets:
        # Hard {0,1} targets: a single log of p_t (prob of the true class).
        # Identical to nn.BCELoss for hard labels, incl. the -100 log clamp.
        p_t = jnp.where(is_pos, x, 1.0 - x)
        bce = -jnp.maximum(jnp.log(p_t), -100.0)
    else:
        # Generic soft-label BCE, matching nn.BCELoss(reduction='none').
        log_x = jnp.maximum(jnp.log(x), -100.0)
        log_1mx = jnp.maximum(jnp.log(1.0 - x), -100.0)
        bce = -(t * log_x + (1.0 - t) * log_1mx)

    alpha_factor = jnp.where(is_pos, alpha, 1.0 - alpha)
    fw = jnp.where(is_pos, 1.0 - x, x)
    if float(gamma) == int(gamma) and 0 <= int(gamma) <= 4:
        # Small integer gamma: repeated VPU multiplies, no EUP pow (= exp+log).
        p = jnp.ones_like(fw)
        for _ in range(int(gamma)):
            p = p * fw
        fw = p
    else:
        fw = jnp.power(fw, gamma)  # generic fallback
    return alpha_factor * fw * bce


def _elem_kernel(x_ref, t_ref, o_ref, *, alpha, gamma, binary_targets):
    x = x_ref[...].astype(jnp.float32)
    t = t_ref[...].astype(jnp.float32)
    loss = _focal_loss_math(x, t, alpha, gamma, binary_targets)
    o_ref[...] = loss.astype(o_ref.dtype)


def _reduce_kernel(x_ref, t_ref, o_ref, *, alpha, gamma, binary_targets,
                   total_rows):
    x = x_ref[...].astype(jnp.float32)
    t = t_ref[...].astype(jnp.float32)
    loss = _focal_loss_math(x, t, alpha, gamma, binary_targets)
    row_tile = x_ref.shape[0]
    if total_rows % row_tile != 0:
        # Partial trailing row block: Pallas only masks *stores*; input rows
        # beyond the valid region hold garbage, so zero them before reducing.
        valid = total_rows - pl.program_id(0) * row_tile
        row_idx = lax.broadcasted_iota(jnp.int32, loss.shape, 0)
        loss = jnp.where(row_idx < valid, loss, 0.0)
    o_ref[...] = jnp.sum(loss, axis=0)[None, None, :]


def _pick_row_tile(rows):
    """Rows per grid step: big (amortize per-step overhead), 32-row aligned for
    packed sub-32-bit dtypes, capped so 3 streams x 2 buffers fit every
    generation's scoped-VMEM limit, and sized to give >= 4 grid steps on larger
    inputs so v7x's two TensorCores each see >= 2 blocks (pipeline steady
    state on both cores)."""
    if rows <= MIN_ROW_TILE:
        return rows  # single full-extent block (always layout-legal)
    quarter = (rows // 4) // ROW_ALIGN * ROW_ALIGN
    return max(MIN_ROW_TILE, min(ROW_TILE_MAX, quarter))


def focal_loss(inputs, targets, alpha=ALPHA, gamma=GAMMA, reduction="none",
               binary_targets=True):
    """Focal loss matching the PyTorch module. `inputs` are probabilities in
    (0, 1); `targets` are (typically binary) labels of the same shape.

    binary_targets=True uses one log/element (exact for hard {0,1} labels);
    set it to False for exact soft-label BCELoss semantics (two logs/element).
    """
    assert inputs.shape == targets.shape
    orig_shape = inputs.shape
    n = inputs.size

    out_dtype = (inputs.dtype if jnp.issubdtype(inputs.dtype, jnp.floating)
                 else jnp.float32)

    # Keep caller dtypes end-to-end; casts happen on the VPU inside the kernel
    # where they are free under the DMA bound.  bool targets are repacked to
    # int8 (1 B/elem) since i1 vectors are awkward in VMEM.
    x_flat = inputs.reshape(-1)
    t_arr = targets.astype(jnp.int8) if targets.dtype == jnp.bool_ else targets
    t_flat = t_arr.reshape(-1)

    n_main = (n // LANES) * LANES
    rows = n_main // LANES
    has_tail = n_main < n

    # Ragged tail (< 128 elems): plain jnp, avoiding a full-array pad/concat
    # (which would re-stream both inputs through HBM).
    tail_loss = None
    if has_tail:
        tail_loss = _focal_loss_math(
            x_flat[n_main:].astype(jnp.float32),
            t_flat[n_main:].astype(jnp.float32),
            alpha, gamma, binary_targets)

    out_main = None
    partial_sum_main = None
    if rows > 0:
        if has_tail:
            x2d = x_flat[:n_main].reshape(rows, LANES)
            t2d = t_flat[:n_main].reshape(rows, LANES)
        else:
            x2d = x_flat.reshape(rows, LANES)   # no copy in the aligned case
            t2d = t_flat.reshape(rows, LANES)

        row_tile = _pick_row_tile(rows)
        num_blocks = pl.cdiv(rows, row_tile)
        grid = (num_blocks,)
        x_bytes = x2d.dtype.itemsize
        t_bytes = t2d.dtype.itemsize
        n_trans = n_main if binary_targets else 2 * n_main

        compiler_params = pltpu.CompilerParams(
            dimension_semantics=("parallel",),
            vmem_limit_bytes=VMEM_LIMIT_BYTES)
        in_specs = [pl.BlockSpec((row_tile, LANES), lambda i: (i, 0)),
                    pl.BlockSpec((row_tile, LANES), lambda i: (i, 0))]

        if reduction == "none":
            kernel = functools.partial(_elem_kernel, alpha=alpha, gamma=gamma,
                                       binary_targets=binary_targets)
            out_main = pl.pallas_call(
                kernel,
                out_shape=jax.ShapeDtypeStruct((rows, LANES), out_dtype),
                grid_spec=pltpu.PrefetchScalarGridSpec(
                    num_scalar_prefetch=0, grid=grid,
                    in_specs=in_specs,
                    out_specs=pl.BlockSpec((row_tile, LANES), lambda i: (i, 0))),
                compiler_params=compiler_params,
                cost_estimate=pl.CostEstimate(
                    flops=8 * n_main,
                    transcendentals=n_trans,
                    bytes_accessed=n_main * (x_bytes + t_bytes
                                             + jnp.dtype(out_dtype).itemsize)),
            )(x2d, t2d)
        else:
            # Fused sum/mean: per-block (1,1,128) partial sums; the kernel only
            # *reads* the big arrays, finished by a tiny jnp.sum below.
            kernel = functools.partial(_reduce_kernel, alpha=alpha, gamma=gamma,
                                       binary_targets=binary_targets,
                                       total_rows=rows)
            partials = pl.pallas_call(
                kernel,
                out_shape=jax.ShapeDtypeStruct((num_blocks, 1, LANES),
                                               jnp.float32),
                grid_spec=pltpu.PrefetchScalarGridSpec(
                    num_scalar_prefetch=0, grid=grid,
                    in_specs=in_specs,
                    out_specs=pl.BlockSpec((1, 1, LANES),
                                           lambda i: (i, 0, 0))),
                compiler_params=compiler_params,
                cost_estimate=pl.CostEstimate(
                    flops=9 * n_main,
                    transcendentals=n_trans,
                    bytes_accessed=n_main * (x_bytes + t_bytes)
                                   + num_blocks * LANES * 4),
            )(x2d, t2d)
            partial_sum_main = jnp.sum(partials)

    if reduction == "none":
        if rows == 0:
            return tail_loss.astype(out_dtype).reshape(orig_shape)
        if has_tail:
            return jnp.concatenate(
                [out_main.reshape(-1), tail_loss.astype(out_dtype)]
            ).reshape(orig_shape)
        return out_main.reshape(orig_shape)

    total = jnp.zeros((), jnp.float32)
    if partial_sum_main is not None:
        total = total + partial_sum_main
    if has_tail:
        total = total + jnp.sum(tail_loss)
    if reduction == "mean":
        total = total / n
    return total.astype(out_dtype)


def _focal_loss_ref(inputs, targets, alpha=ALPHA, gamma=GAMMA):
    """Pure-JAX reference mirroring the PyTorch module (f32)."""
    x = inputs.astype(jnp.float32)
    t = targets.astype(jnp.float32)
    log_x = jnp.maximum(jnp.log(x), -100.0)
    log_1mx = jnp.maximum(jnp.log(1.0 - x), -100.0)
    bce = -(t * log_x + (1.0 - t) * log_1mx)
    alpha_factor = jnp.where(t == 1.0, alpha, 1.0 - alpha)
    focal_weight = jnp.where(t == 1.0, 1.0 - x, x)
    focal_weight = alpha_factor * jnp.power(focal_weight, gamma)
    return focal_weight * bce


if __name__ == "__main__":
    key = jax.random.PRNGKey(0)
    k1, k2, k3, k4, k5, k6 = jax.random.split(key, 6)

    # NCHW, matching the PyTorch module's typical usage.
    B, C, H, W = 2, 4, 16, 16
    x = jax.nn.sigmoid(jax.random.normal(k1, (B, C, H, W), jnp.float32))
    t = (jax.random.uniform(k2, (B, C, H, W)) > 0.7).astype(jnp.float32)
    ref = _focal_loss_ref(x, t)

    out = jax.block_until_ready(focal_loss(x, t, reduction="none"))
    assert out.shape == (B, C, H, W) and out.dtype == x.dtype
    assert jnp.allclose(out, ref, atol=1e-5, rtol=1e-5)

    # Generic soft-label-capable path (two logs) matches for binary targets.
    out_g = jax.block_until_ready(
        focal_loss(x, t, reduction="none", binary_targets=False))
    assert jnp.allclose(out_g, ref, atol=1e-5, rtol=1e-5)

    # Native bf16 inputs + bool targets: no wrapper f32 upcast, bf16 output.
    x_bf = x.astype(jnp.bfloat16)
    t_b = t.astype(jnp.bool_)
    out_bf = jax.block_until_ready(focal_loss(x_bf, t_b, reduction="none"))
    assert out_bf.dtype == jnp.bfloat16
    assert jnp.allclose(out_bf.astype(jnp.float32),
                        _focal_loss_ref(x_bf.astype(jnp.float32), t),
                        atol=2e-2, rtol=2e-2)

    # Ragged size (n % 128 != 0): aligned prefix via the kernel, tiny jnp tail.
    x2 = jax.nn.sigmoid(jax.random.normal(k3, (2, 3, 7, 11), jnp.float32))
    t2 = (jax.random.uniform(k4, (2, 3, 7, 11)) > 0.7).astype(jnp.float32)
    out2 = jax.block_until_ready(focal_loss(x2, t2, reduction="none"))
    assert jnp.allclose(out2, _focal_loss_ref(x2, t2), atol=1e-5, rtol=1e-5)

    # Fused sum / mean, including a partial trailing row block that exercises
    # the in-kernel masking (528 rows -> tile 512 -> 2 grid steps).
    x3 = jax.nn.sigmoid(jax.random.normal(k5, (4, 4, 33, 128), jnp.float32))
    t3 = (jax.random.uniform(k6, (4, 4, 33, 128)) > 0.7).astype(jnp.float32)
    ref3 = _focal_loss_ref(x3, t3)
    s3 = jax.block_until_ready(focal_loss(x3, t3, reduction="sum"))
    m3 = jax.block_until_ready(focal_loss(x3, t3, reduction="mean"))
    assert jnp.allclose(s3, jnp.sum(ref3), rtol=1e-4, atol=1e-2)
    assert jnp.allclose(m3, jnp.mean(ref3), rtol=1e-4, atol=1e-6)

    # Fused sum on the small base case too.
    s = jax.block_until_ready(focal_loss(x, t, reduction="sum"))
    assert jnp.allclose(s, jnp.sum(ref), rtol=1e-4, atol=1e-3)

    print("KERNEL_OK")
</pallas_src>

<mosaic_0001>
module attributes {stable_mosaic.version = 11 : i64} {
  func.func @_elem_kernel(%arg0: i32, %arg1: memref<16x128xf32, #tpu.memory_space<vmem>>, %arg2: memref<16x128xf32, #tpu.memory_space<vmem>>, %arg3: memref<16x128xf32, #tpu.memory_space<vmem>>) attributes {dimension_semantics = [#tpu.dimension_semantics<parallel>], iteration_bounds = array<i64: 1>, scalar_prefetch = 0 : i64, scratch_operands = 0 : i64, tpu.core_type = #tpu.core_type<tc>, window_params = [{transform_indices = @transform_0, window_bounds = array<i64: 16, 128>}, {transform_indices = @transform_1, window_bounds = array<i64: 16, 128>}, {transform_indices = @transform_2, window_bounds = array<i64: 16, 128>}]} {
    %c0 = arith.constant 0 : index
    %c0_0 = arith.constant 0 : index
    %0 = vector.load %arg1[%c0, %c0_0] : memref<16x128xf32, #tpu.memory_space<vmem>>, vector<16x128xf32>
    %c0_1 = arith.constant 0 : index
    %c0_2 = arith.constant 0 : index
    %1 = vector.load %arg2[%c0_1, %c0_2] : memref<16x128xf32, #tpu.memory_space<vmem>>, vector<16x128xf32>
    %cst = arith.constant 1.000000e+00 : f32
    %2 = vector.broadcast %cst : f32 to vector<16x128xf32>
    %3 = arith.cmpf oeq, %1, %2 : vector<16x128xf32>
    %cst_3 = arith.constant 1.000000e+00 : f32
    %4 = vector.broadcast %cst_3 : f32 to vector<16x128xf32>
    %5 = arith.subf %4, %0 : vector<16x128xf32>
    %6 = arith.select %3, %0, %5 : vector<16x128xi1>, vector<16x128xf32>
    %7 = math.log %6 : vector<16x128xf32>
    %cst_4 = arith.constant -1.000000e+02 : f32
    %8 = vector.broadcast %cst_4 : f32 to vector<16x128xf32>
    %9 = arith.maximumf %7, %8 : vector<16x128xf32>
    %cst_5 = arith.constant 0.000000e+00 : f32
    %10 = vector.broadcast %cst_5 : f32 to vector<16x128xf32>
    %11 = arith.subf %10, %9 : vector<16x128xf32>
    %cst_6 = arith.constant 2.500000e-01 : f32
    %cst_7 = arith.constant 7.500000e-01 : f32
    %12 = vector.broadcast %cst_6 : f32 to vector<16x128xf32>
    %13 = vector.broadcast %cst_7 : f32 to vector<16x128xf32>
    %14 = arith.select %3, %12, %13 : vector<16x128xi1>, vector<16x128xf32>
    %cst_8 = arith.constant 1.000000e+00 : f32
    %15 = vector.broadcast %cst_8 : f32 to vector<16x128xf32>
    %16 = arith.subf %15, %0 : vector<16x128xf32>
    %17 = arith.select %3, %16, %0 : vector<16x128xi1>, vector<16x128xf32>
    %cst_9 = arith.constant 1.000000e+00 : f32
    %18 = vector.broadcast %cst_9 : f32 to vector<16x128xf32>
    %19 = arith.mulf %18, %17 : vector<16x128xf32>
    %20 = arith.mulf %19, %17 : vector<16x128xf32>
    %21 = arith.mulf %14, %20 : vector<16x128xf32>
    %22 = arith.mulf %21, %11 : vector<16x128xf32>
    %c0_10 = arith.constant 0 : index
    %c0_11 = arith.constant 0 : index
    %23 = vector.load %arg3[%c0_10, %c0_11] : memref<16x128xf32, #tpu.memory_space<vmem>>, vector<16x128xf32>
    tpu.vector_store %arg3[%c0_10, %c0_11], %22 {strides = array<i32>} : memref<16x128xf32, #tpu.memory_space<vmem>>, vector<16x128xf32>,
    return
  }
  func.func @transform_0(%arg0: i32) -> (i32, i32) {
    %c0_i32 = arith.constant 0 : i32
    %c0_i32_0 = arith.constant 0 : i32
    return %arg0, %c0_i32 : i32, i32
  }
  func.func @transform_1(%arg0: i32) -> (i32, i32) {
    %c0_i32 = arith.constant 0 : i32
    %c0_i32_0 = arith.constant 0 : i32
    return %arg0, %c0_i32 : i32, i32
  }
  func.func @transform_2(%arg0: i32) -> (i32, i32) {
    %c0_i32 = arith.constant 0 : i32
    %c0_i32_0 = arith.constant 0 : i32
    return %arg0, %c0_i32 : i32, i32
  }
}

</mosaic_0001>

<bundles_post_ra>
// kernel: tpu_custom_call.1
= control target key start
LH: loop header
LB: loop body
LE: loop exit
PB: predicated region body
PF: predicated region fallthrough
CT: control target
= control target key end

     0   :  { %7 = vsyncpa [#allocation3], 0  ;;  %s236_s0 = inlined_call_operand.hbm [shape: f32[16,128], index: 0, kind: input, shape index: {}]   ;;  %s237_s1 = inlined_call_operand.hbm [shape: f32[16,128], index: 1, kind: input, shape index: {}]   ;;  %s238_s2 = inlined_call_operand.hbm [shape: f32[16,128], index: 2, kind: output, shape index: {}]  }
   0x1   :  { %8 = vsyncpa [#allocation6], 0 }
   0x2   :  { %9 = vsyncpa [#allocation4], 0  ;;  %s170_s9 = smov [#allocation2]   ;;  %s98_s13 = scalar_lea.hbm %s236_s0, 256 }
   0x3   :  { %s15_s10 = sshll.u32 %s170_s9, 4  ;;  %p99_p0 = scmp.ne.s32.totalorder %s236_s0, %s98_s13  ;;  %s16_s10 = int_to_ptr.vmem [resolvable:$true] %s15_s10 }
   0x4   :  { %p102_p1 = scmp.lt.u32.totalorder %s98_s13, %s236_s0 }
   0x6   :  { %p104_p2 = pnand %p102_p1, %p99_p0 }
   0x8   :  { %107 = shalt.err (!%p104_p2)
}
   0x9   :  { %s108_s18 = scalar_lea.vmem %s16_s10, 256  ;;  %p113_p4 = scmp.lt.s32.totalorder %s16_s10, %s16_s10 }
   0xa   :  { %p109_p3 = scmp.ne.s32.totalorder %s16_s10, %s108_s18  ;;  %p114_p5 = scmp.lt.s32.totalorder %s108_s18, %s108_s18 }
   0xc   :  { %p115_p6 = por %p114_p5, %p113_p4 }
   0xe   :  { %p116_p7 = pnand %p115_p6, %p109_p3 }
  0x10   :  { %119 = shalt.err (!%p116_p7)
}
  0x11   :  { %s171_s19 = smov 128   ;;  %s172_s20 = smov 8  }
  0x12   :  { %21 = dma.hbm_to_vmem [thread:$0]  %s236_s0, 256, %s16_s10, [#allocation3], %s171_s19, %s171_s19, %s172_s20  }
  0x13   :  { %s173_s23 = smov [#allocation5]   ;;  %s120_s27 = scalar_lea.hbm %s237_s1, 256 }
  0x14   :  { %s27_s24 = sshll.u32 %s173_s23, 4  ;;  %p121_p8 = scmp.ne.s32.totalorder %s237_s1, %s120_s27  ;;  %s28_s24 = int_to_ptr.vmem [resolvable:$true] %s27_s24 }
  0x15   :  { %p124_p9 = scmp.lt.u32.totalorder %s120_s27, %s237_s1 }
  0x17   :  { %p126_p10 = pnand %p124_p9, %p121_p8 }
  0x19   :  { %129 = shalt.err (!%p126_p10)
}
  0x1a   :  { %s130_s4 = scalar_lea.vmem %s28_s24, 256  ;;  %p135_p12 = scmp.lt.s32.totalorder %s28_s24, %s28_s24 }
  0x1b   :  { %p131_p11 = scmp.ne.s32.totalorder %s28_s24, %s130_s4  ;;  %p136_p13 = scmp.lt.s32.totalorder %s130_s4, %s130_s4 }
  0x1d   :  { %p137_p0 = por %p136_p13, %p135_p12 }
  0x1f   :  { %p138_p1 = pnand %p137_p0, %p131_p11 }
  0x21   :  { %141 = shalt.err (!%p138_p1)
}
  0x22   :  { %33 = dma.hbm_to_vmem [thread:$0]  %s237_s1, 256, %s28_s24, [#allocation6], %s171_s19, %s171_s19, %s172_s20  }
  0x23   :  { %164 = dma.done.wait [#allocation3], 256  }
  0x24   :  { %165 = vsyncadd [#allocation3], 4294967040 }
  0x25   :  { %166 = dma.done.wait [#allocation6], 256  }
  0x26   :  { %167 = vsyncadd [#allocation6], 4294967040  ;;  %v40_v0 = vld [vmem:[#allocation2] sm:$0xff]  ;;  %v42_v1 = vld [vmem:[#allocation5] sm:$0xff]  ;;  %v174_v12 = vmov 0.75   ;;  %s175_s1 = smov [#allocation7]  }
  0x27   :  { %v41_v2 = vld [vmem:[#allocation2 + $0x8] sm:$0xff]  ;;  %vm44_vm0 = vcmp.eq.f32.partialorder %v42_v1, 1.0  ;;  %v46_v3 = vsub.f32 1.0, %v40_v0  ;;  %v43_v4 = vld [vmem:[#allocation5 + $0x8] sm:$0xff]  ;;  %s75_s6 = sshll.u32 %s175_s1, 4  ;;  %s76_s6 = int_to_ptr.vmem [resolvable:$true] %s75_s6 }
  0x28   :  { %v47_v5 = vsub.f32 1.0, %v41_v2  ;;  %vm45_vm1 = vcmp.eq.f32.partialorder %v43_v4, 1.0  ;;  %v58_v13 = vsel %vm44_vm0, 0.25, %v174_v12  ;;  %s142_s7 = scalar_lea.vmem %s76_s6, 256  ;;  %p147_p3 = scmp.lt.s32.totalorder %s76_s6, %s76_s6 }
  0x29   :  { %v48_v6 = vsel %vm44_vm0, %v40_v0, %v46_v3  ;;  %v60_v8 = vsel %vm44_vm0, %v46_v3, %v40_v0  ;;  %v59_v17 = vsel %vm45_vm1, 0.25, %v174_v12  ;;  %p143_p2 = scmp.ne.s32.totalorder %s76_s6, %s142_s7  ;;  %p148_p4 = scmp.lt.s32.totalorder %s142_s7, %s142_s7 }
  0x2a   :  { %v49_v7 = vsel %vm45_vm1, %v41_v2, %v47_v5  ;;  %94 = vlog2.f32 %v48_v6  ;;  %v61_v9 = vsel %vm45_vm1, %v47_v5, %v41_v2  ;;  %v62_v10 = vmul.f32 %v60_v8, %v60_v8 }
  0x2b   :  { %96 = vlog2.f32 %v49_v7  ;;  %v63_v14 = vmul.f32 %v61_v9, %v61_v9  ;;  %p149_p5 = por %p148_p4, %p147_p3 }
  0x2c   :  { %v64_v20 = vmul.f32 %v62_v10, %v58_v13 }
  0x2d   :  { %v65_v22 = vmul.f32 %v63_v14, %v59_v17  ;;  %p150_p6 = pnand %p149_p5, %p143_p2 }
  0x34   :  { %v95_v11 = vpop.eup %94 }
  0x35   :  { %v97_v15 = vpop.eup %96  ;;  %v51_v16 = vmul.f32 0.6931472, %v95_v11 }
  0x36   :  { %v53_v18 = vmul.f32 0.6931472, %v97_v15 }
  0x37   :  { %v54_v19 = vmax.f32 %v51_v16, -100.0 }
  0x38   :  { %v55_v21 = vmax.f32 %v53_v18, -100.0 }
  0x39   :  { %v56_v23 = vsub.f32 0.0, %v54_v19 }
  0x3a   :  { %v57_v24 = vsub.f32 0.0, %v55_v21 }
  0x3b   :  { %v66_v25 = vmul.f32 %v64_v20, %v56_v23 }
  0x3c   :  { %v67_v26 = vmul.f32 %v65_v22, %v57_v24 }
  0x3d   :  { %68 = vst [vmem:[#allocation7] sm:$0xff] %v66_v25 }
  0x3e   :  { %69 = vst [vmem:[#allocation7 + $0x8] sm:$0xff] %v67_v26 }
  0x3f   :  { %153 = shalt.err (!%p150_p6)
}
  0x40   :  { %s154_s10 = scalar_lea.hbm %s238_s2, 256 }
  0x41   :  { %p155_p7 = scmp.ne.s32.totalorder %s238_s2, %s154_s10  ;;  %p158_p8 = scmp.lt.u32.totalorder %s154_s10, %s238_s2 }
  0x43   :  { %p160_p9 = pnand %p158_p8, %p155_p7 }
  0x45   :  { %163 = shalt.err (!%p160_p9)
}
  0x46   :  { %81 = dma.vmem_to_hbm [thread:$0]  %s76_s6, 256, %s238_s2, [#allocation4], %s171_s19, %s171_s19, %s172_s20  }
  0x47   :  { %168 = dma.done.wait [#allocation4], 256  }
  0x48   :  { %169 = vsyncadd [#allocation4], 4294967040 }
  0x49   :  { %85 = vsyncpa [#allocation3], 1 }
  0x4a   :  { %86 = vsyncpa [#allocation6], 1 }
  0x4b   :  { %87 = vsyncpa [#allocation4], 1 }

</bundles_post_ra>
